<compile_context>
chip_gen: v7x
topology: tpu7x:2x2x1
jax: 0.10.0
libtpu: 0.0.40
codegen_flags: <defaults>
</compile_context>

<pallas_src>
import jax
import jax.numpy as jnp
from jax.experimental import pallas as pl
from jax.experimental.pallas import tpu as pltpu

HIDDEN = 32
NUM_CANDIDATES = 10
DOC_SPACE_SHAPE = 5
USR_OBS_SHAPE = 5
N_STATE = USR_OBS_SHAPE + DOC_SPACE_SHAPE * NUM_CANDIDATES + 5  # 60
N_ACTION = 1  # slate_size = 1


def _mlp_kernel(x_ref, w1_ref, b1_ref, w2_ref, b2_ref, o_ref):
    # fc1 on the MXU, bias + ReLU on the VPU.
    x = x_ref[...]                                               # (TB, N_STATE)
    h = jnp.dot(x, w1_ref[...], preferred_element_type=jnp.float32)
    h = jnp.maximum(h + b1_ref[...], 0.0)                        # (TB, HIDDEN)
    # out layer: N_ACTION == 1 -> VPU multiply with the (1, HIDDEN) weight row
    # + lane reduction instead of an N=1 MXU matmul.
    o = jnp.sum(h * w2_ref[...], axis=-1, keepdims=True)         # (TB, 1)
    o_ref[...] = o + b2_ref[0]                                   # SMEM scalar bias


def _cost(batch):
    return pl.CostEstimate(
        flops=2 * batch * (N_STATE * HIDDEN + HIDDEN * N_ACTION),
        transcendentals=0,
        bytes_accessed=4 * (batch * N_STATE + N_STATE * HIDDEN + HIDDEN
                            + N_ACTION * HIDDEN + N_ACTION + batch * N_ACTION),
    )


def sarsa_net_forward(x, w1, b1, w2, b2, *, tile_b=1024):
    """x: (B, N_STATE) f32 -> (B, N_ACTION) f32.

    w1: (N_STATE, HIDDEN)   -- fc1 weight, pre-transposed to (in, out)
    b1: (1, HIDDEN)
    w2: (N_ACTION, HIDDEN)  -- out weight, torch (out, in) layout
    b2: (N_ACTION,)
    """
    B = x.shape[0]

    if B <= tile_b:
        # Whole problem as one VMEM-resident block: no grid, no pipeline
        # prologue/epilogue -- the kernel is launch/DMA-latency bound anyway.
        return pl.pallas_call(
            _mlp_kernel,
            out_shape=jax.ShapeDtypeStruct((B, N_ACTION), jnp.float32),
            in_specs=[
                pl.BlockSpec(memory_space=pltpu.MemorySpace.VMEM),   # x
                pl.BlockSpec(memory_space=pltpu.MemorySpace.VMEM),   # w1
                pl.BlockSpec(memory_space=pltpu.MemorySpace.VMEM),   # b1
                pl.BlockSpec(memory_space=pltpu.MemorySpace.VMEM),   # w2
                pl.BlockSpec(memory_space=pltpu.MemorySpace.SMEM),   # b2 (scalar)
            ],
            out_specs=pl.BlockSpec(memory_space=pltpu.MemorySpace.VMEM),
            cost_estimate=_cost(B),
        )(x, w1, b1, w2, b2)

    # Batched path: tile over B, weights/biases block-resident, batch axis
    # "parallel" so multi-TensorCore chips can split the grid.  x tiles are
    # auto double-buffered by the BlockSpec pipeline.
    nb = pl.cdiv(B, tile_b)
    b_pad = nb * tile_b
    if b_pad != B:
        x = jnp.pad(x, ((0, b_pad - B), (0, 0)))

    out = pl.pallas_call(
        _mlp_kernel,
        out_shape=jax.ShapeDtypeStruct((b_pad, N_ACTION), jnp.float32),
        grid=(nb,),
        in_specs=[
            pl.BlockSpec((tile_b, N_STATE), lambda i: (i, 0)),     # x tile
            pl.BlockSpec((N_STATE, HIDDEN), lambda i: (0, 0)),     # w1 resident
            pl.BlockSpec((1, HIDDEN), lambda i: (0, 0)),           # b1 resident
            pl.BlockSpec((N_ACTION, HIDDEN), lambda i: (0, 0)),    # w2 resident
            pl.BlockSpec(memory_space=pltpu.MemorySpace.SMEM),     # b2 (scalar)
        ],
        out_specs=pl.BlockSpec((tile_b, N_ACTION), lambda i: (i, 0)),
        compiler_params=pltpu.CompilerParams(
            dimension_semantics=("parallel",)),
        cost_estimate=_cost(b_pad),
    )(x, w1, b1, w2, b2)
    return out[:B]


def init_params(key):
    """Deterministic synthetic init (same fan-in uniform scheme as torch)."""
    k1, k2, k3, k4 = jax.random.split(key, 4)
    bound1 = 1.0 / jnp.sqrt(N_STATE)
    bound2 = 1.0 / jnp.sqrt(HIDDEN)
    # fc1 stored as (in, out) -- transposed relative to torch's (out, in)
    w1 = jax.random.uniform(k1, (N_STATE, HIDDEN), jnp.float32, -bound1, bound1)
    b1 = jax.random.uniform(k2, (1, HIDDEN), jnp.float32, -bound1, bound1)
    # out layer kept in torch's (out, in) layout = (1, HIDDEN)
    w2 = jax.random.uniform(k3, (N_ACTION, HIDDEN), jnp.float32, -bound2, bound2)
    b2 = jax.random.uniform(k4, (N_ACTION,), jnp.float32, -bound2, bound2)
    return w1, b1, w2, b2


if __name__ == "__main__":
    key = jax.random.PRNGKey(0)
    kx, kp, kx2 = jax.random.split(key, 3)
    w1, b1, w2, b2 = init_params(kp)

    # Small-batch path (single VMEM-resident block, no grid).
    B = 8
    x = jax.random.normal(kx, (B, N_STATE), jnp.float32)
    out = jax.block_until_ready(sarsa_net_forward(x, w1, b1, w2, b2))
    ref = jnp.maximum(x @ w1 + b1, 0.0) @ w2.T + b2
    assert out.shape == (B, N_ACTION)
    assert jnp.allclose(out, ref, atol=1e-5, rtol=1e-5)

    # Batched path (grid over B, "parallel" axis, resident weights, padding).
    B2 = 600
    x2 = jax.random.normal(kx2, (B2, N_STATE), jnp.float32)
    out2 = jax.block_until_ready(
        sarsa_net_forward(x2, w1, b1, w2, b2, tile_b=256))
    ref2 = jnp.maximum(x2 @ w1 + b1, 0.0) @ w2.T + b2
    assert out2.shape == (B2, N_ACTION)
    assert jnp.allclose(out2, ref2, atol=1e-4, rtol=1e-4)

    print("KERNEL_OK")
</pallas_src>

<mosaic_0001>
module attributes {stable_mosaic.version = 11 : i64} {
  func.func @_mlp_kernel(%arg0: memref<8x60xf32, #tpu.memory_space<vmem>>, %arg1: memref<60x32xf32, #tpu.memory_space<vmem>>, %arg2: memref<1x32xf32, #tpu.memory_space<vmem>>, %arg3: memref<1x32xf32, #tpu.memory_space<vmem>>, %arg4: memref<1xf32, #tpu.memory_space<smem>>, %arg5: memref<8x1xf32, #tpu.memory_space<vmem>>) attributes {dimension_semantics = [], scalar_prefetch = 0 : i64, scratch_operands = 0 : i64, tpu.core_type = #tpu.core_type<tc>} {
    %c0 = arith.constant 0 : index
    %c0_0 = arith.constant 0 : index
    %0 = vector.load %arg0[%c0, %c0_0] : memref<8x60xf32, #tpu.memory_space<vmem>>, vector<8x60xf32>
    %c0_1 = arith.constant 0 : index
    %c0_2 = arith.constant 0 : index
    %1 = vector.load %arg1[%c0_1, %c0_2] : memref<60x32xf32, #tpu.memory_space<vmem>>, vector<60x32xf32>
    %cst = arith.constant dense<0.000000e+00> : vector<8x32xf32>
    %2 = tpu.matmul %0, %1, %cst {dimension_numbers = #tpu.dot_dimension_numbers<[1], [0], [0], [1], [0, 0, 1, 1], [], []>} : vector<8x60xf32>, vector<60x32xf32>, vector<8x32xf32> -> vector<8x32xf32>
    %c0_3 = arith.constant 0 : index
    %c0_4 = arith.constant 0 : index
    %3 = vector.load %arg2[%c0_3, %c0_4] : memref<1x32xf32, #tpu.memory_space<vmem>>, vector<1x32xf32>
    %4 = vector.broadcast %3 : vector<1x32xf32> to vector<8x32xf32>
    %5 = arith.addf %2, %4 : vector<8x32xf32>
    %cst_5 = arith.constant 0.000000e+00 : f32
    %6 = vector.broadcast %cst_5 : f32 to vector<8x32xf32>
    %7 = arith.maximumf %5, %6 : vector<8x32xf32>
    %c0_6 = arith.constant 0 : index
    %c0_7 = arith.constant 0 : index
    %8 = vector.load %arg3[%c0_6, %c0_7] : memref<1x32xf32, #tpu.memory_space<vmem>>, vector<1x32xf32>
    %9 = vector.broadcast %8 : vector<1x32xf32> to vector<8x32xf32>
    %10 = arith.mulf %7, %9 : vector<8x32xf32>
    %cst_8 = arith.constant dense<0.000000e+00> : vector<8xf32>
    %11 = vector.multi_reduction <add>, %10, %cst_8 [1] : vector<8x32xf32> to vector<8xf32>
    %12 = vector.shape_cast %11 : vector<8xf32> to vector<8x1xf32>
    %c0_9 = arith.constant 0 : index
    %13 = memref.load %arg4[%c0_9] : memref<1xf32, #tpu.memory_space<smem>>
    %14 = vector.broadcast %13 : f32 to vector<8x1xf32>
    %15 = arith.addf %12, %14 : vector<8x1xf32>
    %c0_10 = arith.constant 0 : index
    %c0_11 = arith.constant 0 : index
    %16 = vector.load %arg5[%c0_10, %c0_11] : memref<8x1xf32, #tpu.memory_space<vmem>>, vector<8x1xf32>
    tpu.vector_store %arg5[%c0_10, %c0_11], %15 {strides = array<i32>} : memref<8x1xf32, #tpu.memory_space<vmem>>, vector<8x1xf32>,
    return
  }
}

</mosaic_0001>

<bundles_post_ra>
// kernel: tpu_custom_call.1
= control target key start
LH: loop header
LB: loop body
LE: loop exit
PB: predicated region body
PF: predicated region fallthrough
CT: control target
= control target key end

     0   :  { %v186_v0 = vmov 0.0|0.0   ;;  %vm187_vm0 = vmmov 0   ;;  %v188_v6 = vmov 0.0   ;;  %vm41_vm1 = vcmask 1043456   ;;  %s259_s1 = inlined_call_operand.vmem [shape: f32[60,32], index: 1, kind: input, shape index: {}]   ;;  %s260_s0 = inlined_call_operand.vmem [shape: f32[8,60], index: 0, kind: input, shape index: {}]   ;;  %s261_s2 = inlined_call_operand.vmem [shape: f32[1,32], index: 2, kind: input, shape index: {}]   ;;  %s262_s3 = inlined_call_operand.vmem [shape: f32[1,32], index: 3, kind: input, shape index: {}]   ;;  %s263_s4 = inlined_call_operand.<no memory space> [shape: f32[1], index: 4, kind: input, shape index: {}]   ;;  %s264_s5 = inlined_call_operand.vmem [shape: f32[8,1], index: 5, kind: output, shape index: {}]  }
   0x1   :  { %169 = vmatprep.subr.bf16.mxu0 %v186_v0  ;;  %v22_v1 = vld [vmem:[%s259_s1] sm:$0xff]  ;;  %v23_v2 = vld [vmem:[%s259_s1 + $0x8] sm:$0xff]  ;;  %v24_v3 = vld [vmem:[%s259_s1 + $0x10] sm:$0xff]  ;;  %166 = vmatprep.mubr.msk.f32.mxu0 %vm187_vm0, %v188_v6  ;;  %vm189_vm2 = vmmov 1   ;;  %vm37_vm4 = vcmask 490496   ;;  %vm124_vm5 = vcmask 261120   ;;  %v129_v23 = vstv %s263_s4 }
   0x2   :  { %v170_v4 = vpack.c.bf16 %v23_v2, %v22_v1  ;;  %v25_v5 = vld [vmem:[%s259_s1 + $0x18] sm:$0xff]  ;;  %v26_v8 = vld [vmem:[%s259_s1 + $0x20] sm:$0xff]  ;;  %v27_v9 = vld [vmem:[%s259_s1 + $0x28] sm:$0xff]  ;;  %vm131_vm6 = vcmask 7168  }
   0x3   :  { %v173_v7 = vpack.c.bf16 %v25_v5, %v24_v3  ;;  %v176_v10 = vpack.c.bf16 %v27_v9, %v26_v8  ;;  %v28_v11 = vld [vmem:[%s259_s1 + $0x30] sm:$0xff]  ;;  %v29_v12 = vld [vmem:[%s259_s1 + $0x38] sm:$0xf]  ;;  %vm180_vm3 = vmpackc.low %vm41_vm1, %vm189_vm2 }
   0x4   :  { %171 = vmatpush3.bf16.msra.mxu0 %v170_v4  ;;  %v179_v13 = vpack.c.bf16 %v29_v12, %v28_v11  ;;  %v21_v14 = vld [vmem:[%s260_s0] sm:$0xff] }
   0x5   :  { %172 = vmatprep.subr.bf16.mxu0 %v186_v0  ;;  %v137_v15 = vld [vmem:[%s261_s2] ss:$0 sm:$0xff] }
   0x6   :  { %v140_v19 = vld [vmem:[%s262_s3] ss:$0 sm:$0xff] }
   0x8   :  { %174 = vmatpush3.bf16.msra.mxu0 %v173_v7 }
   0x9   :  { %175 = vmatprep.subr.bf16.mxu0 %v186_v0 }
   0xc   :  { %177 = vmatpush3.bf16.msra.mxu0 %v176_v10 }
   0xd   :  { %178 = vmatprep.subr.bf16.mxu0 %v186_v0 }
  0x10   :  { %181 = vmatpush3.bf16.msk.msra.mxu0 %vm180_vm3, %v179_v13 }
  0x13   :  { %167 = vmatmul.mubr.msk.f32.vlgmr.msra.gmra.mrb[0].mxu0 %vm37_vm4, %v21_v14 }
  0xe6   :  { %v111_v16 = vpop.f32.mrb[0].mxu0 }
  0xe7   :  { %v112_v17 = vadd.f32 %v137_v15, %v111_v16  ;;  %v168_v18 = vpop.f32.mrb[1].mxu0 }
  0xe9   :  { %v115_v20 = vmax.f32 %v112_v17, 0.0 }
  0xeb   :  { %v123_v21 = vmul.f32 %v140_v19, %v115_v20 }
  0xed   :  { %v125_v22 = vsel %vm124_vm5, %v123_v21, 0.0 }
  0xee   :  { %126 = vadd.xlane.f32.xlu0 %v125_v22 }
 0x17b   :  { %v127_v24 = vpop.xlane.xlu0 %126 }
 0x17c   :  { %v130_v25 = vadd.f32 %v129_v23, %v127_v24 }
 0x17e   :  { %132 = vst.msk [vmem:[%s264_s5] sm:$0xff] %vm131_vm6, %v130_v25 }

</bundles_post_ra>
